<compile_context>
chip_gen: v5e
topology: v5e:2x2
jax: 0.10.0
libtpu: 0.0.40
codegen_flags: <defaults>
</compile_context>

<pallas_src>
import functools

import jax
import jax.numpy as jnp
from jax.experimental import pallas as pl
from jax.experimental.pallas import tpu as pltpu


def _make_focal_kernel(gamma, ignore_index, n_rows, tile_n):
    gamma = float(gamma)
    gamma_is_int = gamma == float(int(round(gamma))) and gamma >= 0
    gamma_int = int(round(gamma))

    def focal_kernel(x_ref, t_ref, sum_ref):
        x = x_ref[...].astype(jnp.float32)               # [TILE_N, C]
        t = t_ref[...]                                   # [TILE_N, 1] int32

        # Ragged-tail mask: rows past N hold undefined (possibly NaN/garbage)
        # data and garbage targets, so validity is gated on the global row id.
        row = jax.lax.broadcasted_iota(jnp.int32, t.shape, 0)   # [TILE_N, 1]
        row_ok = (pl.program_id(0) * tile_n + row) < n_rows

        # Stable logsumexp along classes (no full log-softmax kept).
        m = jnp.max(x, axis=1, keepdims=True)            # [TILE_N, 1]
        z = x - m                                        # [TILE_N, C]
        lse = jnp.log(jnp.sum(jnp.exp(z), axis=1, keepdims=True))
        # NOTE: on v7x with bf16 inputs this lane reduce could be routed
        # through the MXU (dot with a ones slab) to free the XLU/VPU; at f32
        # rates the kernel stays HBM-bound without it.

        # Gather shifted target logit via masked sum (one-hot never stored).
        col = jax.lax.broadcasted_iota(jnp.int32, x.shape, 1)   # [TILE_N, C]
        z_t = jnp.sum(jnp.where(col == t, z, 0.0), axis=1, keepdims=True)
        logpt_t = z_t - lse                              # [TILE_N, 1]
        pt_t = jnp.exp(logpt_t)

        w = jnp.maximum(1.0 - pt_t, 0.0)                 # clamp tiny negatives
        if gamma_is_int:
            mod = jnp.ones_like(w)
            for _ in range(gamma_int):                   # gamma=2 -> w*w (VPU)
                mod = mod * w
        else:
            # Guard pow at w == 0: exp(gamma*log(0)) -> NaN on some lowerings.
            w_safe = jnp.where(w > 0.0, w, 1.0)
            mod = jnp.where(w > 0.0, w_safe ** gamma, 0.0)
        focal = mod * logpt_t                            # [TILE_N, 1]

        valid = (t != ignore_index) & row_ok
        per = jnp.where(valid, -focal, 0.0)
        sum_ref[0, 0] = jnp.sum(per)

    return focal_kernel


def _vmem_budgets():
    """(target logits-block bytes, vmem_limit_bytes) per TPU generation."""
    try:
        kind = jax.devices()[0].device_kind.lower()
    except Exception:
        kind = ""
    if ("v4" in kind) or ("v5" in kind) or ("v6" in kind):
        # 128 MiB physical VMEM: big blocks amortize per-step overhead.
        return 8 * 1024 * 1024, 96 * 1024 * 1024
    # v7x (64 MiB VMEM per TC) or unknown backend: stay conservative so
    # 2x double-buffered blocks + f32 temporaries leave Mosaic headroom.
    return 4 * 1024 * 1024, 48 * 1024 * 1024


def focal_loss(x, target, gamma=2.0, ignore_index=-100, tile_n=None):
    """x: [N, C] float (f32/bf16), target: [N] int.  Scalar mean focal loss.

    Behavior note: targets outside [0, C) that are not ignore_index contribute
    z_t = 0 (i.e. a mod*lse term) instead of raising like PyTorch.
    """
    # TODO(synk): per-class `weight` argument of F.nll_loss not implemented
    # (module default is weight=None).
    # TODO(synk): vocabulary-scale C (>= ~32k) would need a second grid axis
    # over C with an online (flash-style) max/logsumexp to bound VMEM.
    N, C = x.shape

    itemsize = jnp.dtype(x.dtype).itemsize
    sublane = {4: 8, 2: 16, 1: 32}.get(itemsize, 8)
    target_block_bytes, vmem_limit = _vmem_budgets()

    if tile_n is None:
        bytes_per_row = max(C * itemsize, 1)
        tile_n = target_block_bytes // bytes_per_row
        tile_n = max(sublane, min(2048, tile_n))
        # Cap at ceil(N/2) (rounded up to the sublane multiple) so there are
        # at least 2 grid blocks whenever N allows -> both v7x TCs get work.
        half = -(-N // 2)
        half = -(-half // sublane) * sublane
        tile_n = min(tile_n, half)
        tile_n = max(sublane, (tile_n // sublane) * sublane)
    else:
        tile_n = max(sublane, (int(tile_n) // sublane) * sublane)

    num_blocks = pl.cdiv(N, tile_n)

    t2d = target.astype(jnp.int32).reshape(N, 1)

    kernel = _make_focal_kernel(gamma, int(ignore_index), N, tile_n)
    part_sum = pl.pallas_call(
        kernel,
        out_shape=jax.ShapeDtypeStruct((num_blocks, 1), jnp.float32),
        grid=(num_blocks,),
        in_specs=[
            pl.BlockSpec((tile_n, C), lambda i: (i, 0)),
            pl.BlockSpec((tile_n, 1), lambda i: (i, 0)),
        ],
        out_specs=pl.BlockSpec((1, 1), lambda i: (i, 0),
                               memory_space=pltpu.MemorySpace.SMEM),
        compiler_params=pltpu.CompilerParams(
            dimension_semantics=("parallel",),
            vmem_limit_bytes=vmem_limit,
        ),
    )(x, t2d)

    # Mean over non-ignored rows (nll_loss reduction='mean'); the valid count
    # is computed wrapper-side in int32 (exact), NaN when everything is
    # ignored -- same as PyTorch.
    cnt = jnp.sum((target != ignore_index).astype(jnp.int32))
    return (jnp.sum(part_sum) / cnt.astype(jnp.float32)).astype(jnp.float32)


def _focal_loss_ref(x, target, gamma=2.0, ignore_index=-100):
    """Pure-JAX reference mirroring the PyTorch module."""
    x = x.astype(jnp.float32)
    logpt = jax.nn.log_softmax(x, axis=1)
    pt = jnp.exp(logpt)
    logpt = (1.0 - pt) ** gamma * logpt
    N, _ = x.shape
    valid = target != ignore_index
    safe_t = jnp.where(valid, target, 0)
    gathered = logpt[jnp.arange(N), safe_t]
    per = jnp.where(valid, -gathered, 0.0)
    return jnp.sum(per) / jnp.sum(valid.astype(jnp.float32))


if __name__ == "__main__":
    key = jax.random.PRNGKey(0)
    kx, kt = jax.random.split(key)

    # Case 1: divisible shape, default gamma=2, exercises ignore_index.
    N, C = 8, 16
    x = jax.random.normal(kx, (N, C), dtype=jnp.float32)
    target = jax.random.randint(kt, (N,), 0, C, dtype=jnp.int32)
    target = target.at[3].set(-100)
    loss = jax.block_until_ready(jax.jit(focal_loss)(x, target))
    ref = _focal_loss_ref(x, target)
    assert jnp.allclose(loss, ref, atol=1e-5, rtol=1e-5), (loss, ref)

    # Case 2: ragged N (tail block masked in-kernel, no jnp.pad of logits).
    N2, C2 = 13, 24
    x2 = jax.random.normal(kx, (N2, C2), dtype=jnp.float32)
    t2 = jax.random.randint(kt, (N2,), 0, C2, dtype=jnp.int32)
    t2 = t2.at[0].set(-100)
    loss2 = jax.block_until_ready(jax.jit(focal_loss)(x2, t2))
    ref2 = _focal_loss_ref(x2, t2)
    assert jnp.allclose(loss2, ref2, atol=1e-5, rtol=1e-5), (loss2, ref2)

    # Case 3: non-integer gamma (pow fallback path, guarded at w == 0).
    f15 = jax.jit(functools.partial(focal_loss, gamma=1.5))
    loss3 = jax.block_until_ready(f15(x2, t2))
    ref3 = _focal_loss_ref(x2, t2, gamma=1.5)
    assert jnp.allclose(loss3, ref3, atol=1e-5, rtol=1e-5), (loss3, ref3)

    # Case 4: bf16 logits (HBM-side bytes halved; math still f32 in-kernel).
    N4, C4 = 16, 32
    x4 = jax.random.normal(kx, (N4, C4), dtype=jnp.float32).astype(jnp.bfloat16)
    t4 = jax.random.randint(kt, (N4,), 0, C4, dtype=jnp.int32)
    loss4 = jax.block_until_ready(jax.jit(focal_loss)(x4, t4))
    ref4 = _focal_loss_ref(x4, t4)
    assert jnp.allclose(loss4, ref4, atol=2e-2, rtol=2e-2), (loss4, ref4)

    print("KERNEL_OK")
</pallas_src>

<mosaic_0001>
module attributes {stable_mosaic.version = 11 : i64} {
  func.func @focal_kernel(%arg0: i32, %arg1: memref<8x16xf32, #tpu.memory_space<vmem>>, %arg2: memref<8x1xi32, #tpu.memory_space<vmem>>, %arg3: memref<1x1xf32, #tpu.memory_space<smem>>) attributes {dimension_semantics = [#tpu.dimension_semantics<parallel>], iteration_bounds = array<i64: 1>, scalar_prefetch = 0 : i64, scratch_operands = 0 : i64, tpu.core_type = #tpu.core_type<tc>, window_params = [{transform_indices = @transform_0, window_bounds = array<i64: 8, 16>}, {transform_indices = @transform_1, window_bounds = array<i64: 8, 1>}, {transform_indices = @transform_2, window_bounds = array<i64: 1, 1>}]} {
    %c0 = arith.constant 0 : index
    %c0_0 = arith.constant 0 : index
    %0 = vector.load %arg1[%c0, %c0_0] : memref<8x16xf32, #tpu.memory_space<vmem>>, vector<8x16xf32>
    %c0_1 = arith.constant 0 : index
    %c0_2 = arith.constant 0 : index
    %1 = vector.load %arg2[%c0_1, %c0_2] : memref<8x1xi32, #tpu.memory_space<vmem>>, vector<8x1xi32>
    %2 = tpu.iota {dimensions = array<i32: 0>} : vector<8x1xi32>
    %c8_i32 = arith.constant 8 : i32
    %3 = arith.muli %arg0, %c8_i32 : i32
    %4 = vector.broadcast %3 : i32 to vector<8x1xi32>
    %5 = arith.addi %4, %2 : vector<8x1xi32>
    %c8_i32_3 = arith.constant 8 : i32
    %6 = vector.broadcast %c8_i32_3 : i32 to vector<8x1xi32>
    %7 = arith.cmpi slt, %5, %6 : vector<8x1xi32>
    %cst = arith.constant dense<0xFF800000> : vector<8xf32>
    %8 = vector.multi_reduction <maximumf>, %0, %cst [1] : vector<8x16xf32> to vector<8xf32>
    %9 = vector.shape_cast %8 : vector<8xf32> to vector<8x1xf32>
    %10 = vector.broadcast %9 : vector<8x1xf32> to vector<8x16xf32>
    %11 = arith.subf %0, %10 : vector<8x16xf32>
    %12 = math.exp %11 : vector<8x16xf32>
    %cst_4 = arith.constant dense<0.000000e+00> : vector<8xf32>
    %13 = vector.multi_reduction <add>, %12, %cst_4 [1] : vector<8x16xf32> to vector<8xf32>
    %14 = vector.shape_cast %13 : vector<8xf32> to vector<8x1xf32>
    %15 = math.log %14 : vector<8x1xf32>
    %16 = tpu.iota {dimensions = array<i32: 1>} : vector<8x16xi32>
    %17 = vector.broadcast %1 : vector<8x1xi32> to vector<8x16xi32>
    %18 = arith.cmpi eq, %16, %17 : vector<8x16xi32>
    %cst_5 = arith.constant 0.000000e+00 : f32
    %19 = vector.broadcast %cst_5 : f32 to vector<8x16xf32>
    %20 = arith.select %18, %11, %19 : vector<8x16xi1>, vector<8x16xf32>
    %cst_6 = arith.constant dense<0.000000e+00> : vector<8xf32>
    %21 = vector.multi_reduction <add>, %20, %cst_6 [1] : vector<8x16xf32> to vector<8xf32>
    %22 = vector.shape_cast %21 : vector<8xf32> to vector<8x1xf32>
    %23 = arith.subf %22, %15 : vector<8x1xf32>
    %24 = math.exp %23 : vector<8x1xf32>
    %cst_7 = arith.constant 1.000000e+00 : f32
    %25 = vector.broadcast %cst_7 : f32 to vector<8x1xf32>
    %26 = arith.subf %25, %24 : vector<8x1xf32>
    %cst_8 = arith.constant 0.000000e+00 : f32
    %27 = vector.broadcast %cst_8 : f32 to vector<8x1xf32>
    %28 = arith.maximumf %26, %27 : vector<8x1xf32>
    %cst_9 = arith.constant 1.000000e+00 : f32
    %29 = vector.broadcast %cst_9 : f32 to vector<8x1xf32>
    %30 = arith.mulf %29, %28 : vector<8x1xf32>
    %31 = arith.mulf %30, %28 : vector<8x1xf32>
    %32 = arith.mulf %31, %23 : vector<8x1xf32>
    %c-100_i32 = arith.constant -100 : i32
    %33 = vector.broadcast %c-100_i32 : i32 to vector<8x1xi32>
    %34 = arith.cmpi ne, %1, %33 : vector<8x1xi32>
    %35 = arith.andi %34, %7 : vector<8x1xi1>
    %cst_10 = arith.constant 0.000000e+00 : f32
    %36 = vector.broadcast %cst_10 : f32 to vector<8x1xf32>
    %37 = arith.subf %36, %32 : vector<8x1xf32>
    %cst_11 = arith.constant 0.000000e+00 : f32
    %38 = vector.broadcast %cst_11 : f32 to vector<8x1xf32>
    %39 = arith.select %35, %37, %38 : vector<8x1xi1>, vector<8x1xf32>
    %40 = vector.shape_cast %39 : vector<8x1xf32> to vector<1x8x1xf32>
    %cst_12 = arith.constant dense<0.000000e+00> : vector<1xf32>
    %41 = vector.multi_reduction <add>, %40, %cst_12 [1, 2] : vector<1x8x1xf32> to vector<1xf32>
    %42 = vector.shape_cast %41 : vector<1xf32> to vector<1x1x1xf32>
    %43 = vector.extract %42[0, 0, 0] : f32 from vector<1x1x1xf32>
    %c0_13 = arith.constant 0 : index
    %c0_14 = arith.constant 0 : index
    %44 = memref.load %arg3[%c0_13, %c0_14] : memref<1x1xf32, #tpu.memory_space<smem>>
    memref.store %43, %arg3[%c0_13, %c0_14] : memref<1x1xf32, #tpu.memory_space<smem>>
    return
  }
  func.func @transform_0(%arg0: i32) -> (i32, i32) {
    %c0_i32 = arith.constant 0 : i32
    %c0_i32_0 = arith.constant 0 : i32
    return %arg0, %c0_i32 : i32, i32
  }
  func.func @transform_1(%arg0: i32) -> (i32, i32) {
    %c0_i32 = arith.constant 0 : i32
    %c0_i32_0 = arith.constant 0 : i32
    return %arg0, %c0_i32 : i32, i32
  }
  func.func @transform_2(%arg0: i32) -> (i32, i32) {
    %c0_i32 = arith.constant 0 : i32
    %c0_i32_0 = arith.constant 0 : i32
    return %arg0, %c0_i32 : i32, i32
  }
}

</mosaic_0001>

<bundles_post_ra>
// kernel: focal_loss.1
= control target key start
LH: loop header
LB: loop body
LE: loop exit
PB: predicated region body
PF: predicated region fallthrough
CT: control target
= control target key end

     0   :  { %vm20_vm0 = vcmask 130048   ;;  %s135_s0 = inlined_call_operand.vmem [shape: f32[8,16], index: 0, kind: input, shape index: {}]   ;;  %s136_s1 = inlined_call_operand.vmem [shape: s32[8,1], index: 1, kind: input, shape index: {}]   ;;  %s137_s2 = inlined_call_operand.hbm [shape: f32[1,1], index: 2, kind: output, shape index: {}]  }
   0x1   :  { %v12_v0 = vld [vmem:[%s135_s0] sm:$0xff] }
   0x2   :  { %7 = vsyncpa [#allocation3], 0  ;;  %v21_v1 = vsel %vm20_vm0, %v12_v0, -inf  ;;  %v106_v2 = vmov 0   ;;  %v13_v3 = vld [vmem:[%s136_s1] sm:$0xff]  ;;  %v32_v9 = vlaneseq  ;;  %vm53_vm3 = vcmask 7168  }
   0x3   :  { %85 = vset.pattern.permute.xlu0 %v106_v2  ;;  %vm49_vm2 = vcmp.ne.s32.totalorder %v13_v3, 4294967196  ;;  %s71_s13 = sshll.u32 %s137_s2, 4  ;;  %s107_s15 = smov [#allocation2]   ;;  %s72_s13 = int_to_ptr.hbm [resolvable:$true] %s71_s13 }
   0x4   :  { %22 = vmax.xlane.f32.xlu0 %v21_v1  ;;  %v33_v10 = vand.u32 127, %v32_v9 }
  0x18   :  { %35 = vperm.xlu0 %85, %v13_v3  }
  0x77   :  { %v23_v4 = vpop.xlane.xlu0 %22 }
  0x78   :  { %v24_v5 = vsub.f32 %v12_v0, %v23_v4 }
  0x7a   :  { %v25_v6 = vmul.f32 1.442695, %v24_v5 }
  0x7c   :  { %86 = vpow2.f32 %v25_v6 }
  0x82   :  { %v87_v7 = vpop.eup %86 }
  0x83   :  { %v27_v8 = vsel %vm20_vm0, %v87_v7, 0.0 }
  0x84   :  { %28 = vadd.xlane.f32.xlu1 %v27_v8 }
  0x8a   :  { %v36_v11 = vpop.permute.xlu0 %35 }
  0x8b   :  { %vm37_vm1 = vcmp.eq.s32.totalorder %v33_v10, %v36_v11 }
  0x8c   :  { %v38_v12 = vsel %vm37_vm1, %v24_v5, 0.0 }
  0x8d   :  { %v39_v13 = vsel %vm20_vm0, %v38_v12, 0.0 }
  0x8e   :  { %40 = vadd.xlane.f32.xlu1 %v39_v13 }
  0xf7   :  { %v29_v14 = vpop.xlane.xlu1 %28 }
  0xf8   :  { %88 = vlog2.f32 %v29_v14 }
  0xfe   :  { %v89_v15 = vpop.eup %88 }
  0xff   :  { %v31_v16 = vmul.f32 0.6931472, %v89_v15 }
 0x101   :  { %v41_v17 = vpop.xlane.xlu1 %40 }
 0x102   :  { %v42_v18 = vsub.f32 %v41_v17, %v31_v16 }
 0x104   :  { %v43_v19 = vmul.f32 1.442695, %v42_v18 }
 0x106   :  { %90 = vpow2.f32 %v43_v19 }
 0x10c   :  { %v91_v20 = vpop.eup %90 }
 0x10d   :  { %v45_v21 = vsub.f32 1.0, %v91_v20 }
 0x10f   :  { %v46_v22 = vmax.f32 %v45_v21, 0.0 }
 0x111   :  { %v47_v23 = vmul.f32 %v46_v22, %v46_v22 }
 0x113   :  { %v48_v24 = vmul.f32 %v47_v23, %v42_v18 }
 0x115   :  { %v51_v25 = vsub.f32 0.0, %v48_v24 }
 0x117   :  { %v52_v26 = vsel %vm49_vm2, %v51_v25, 0.0 }
 0x118   :  { %v54_v27 = vsel %vm53_vm3, %v52_v26, 0.0 }
 0x119   :  { %55 = vadd.xlane.f32.xlu2 %v54_v27 }
 0x18c   :  { %v56_v28 = vpop.xlane.xlu2 %55 }
 0x18d   :  { %v57_v29 = vrot.slane %v56_v28, 4 }
 0x18f   :  { %v58_v30 = vadd.f32 %v57_v29, %v56_v28 }
 0x191   :  { %v59_v31 = vrot.slane %v58_v30, 2 }
 0x193   :  { %v60_v32 = vadd.f32 %v59_v31, %v58_v30 }
 0x195   :  { %v61_v33 = vrot.slane %v60_v32, 1 }
 0x197   :  { %v62_v34 = vadd.f32 %v61_v33, %v60_v32 }
 0x199   :  { %81 = vpush %v62_v34 }
 0x1ca   :  { %s82_s14 = spop %81 }
 0x1cb   :  { %65 = sst [smem:[#allocation2]] %s82_s14 }
 0x1cc   :  { %74 = dma.smem_to_hbm %s107_s15, 16, %s72_s13, [#allocation3]  }
 0x1cd   :  { %104 = dma.done.wait [#allocation3], 16  }
 0x1ce   :  { %105 = vsyncadd [#allocation3], 4294967280 }
 0x1cf   :  { %79 = sfence }
 0x1d0   :  { %80 = vsyncpa [#allocation3], 1 }

</bundles_post_ra>
